<compile_context>
chip_gen: v5e
topology: v5e:2x2
jax: 0.10.0
libtpu: 0.0.40
codegen_flags: <defaults>
</compile_context>

<pallas_src>
import numpy as np
import jax
import jax.numpy as jnp
from jax.experimental import pallas as pl
from jax.experimental.pallas import tpu as pltpu

# Pin the pure-JAX reference matmuls to true f32 so the f32 correctness check
# is meaningful on TPU (defaults would use bf16 passes).
jax.config.update("jax_default_matmul_precision", "highest")


# ----------------------------------------------------------------------------
# Kernel: one grid step == one RNN timestep.  Weights are resident (constant
# block index), hidden state lives in VMEM scratch across the whole grid.
# ----------------------------------------------------------------------------
def mult_rnn_seq_kernel(x_ref, h0_ref, wfx_ref, wfh_t_ref, whf_t_ref, whx_t_ref,
                        woh_ref, bo_ref, o_ref, h_ref, h_scr):
    f32 = jnp.float32
    pdt = wfh_t_ref.dtype            # param / MXU-input dtype (f32 or bf16)

    @pl.when(pl.program_id(0) == 0)
    def _():                         # initialize the carried hidden state once
        h_scr[...] = h0_ref[...].astype(f32)

    x = x_ref[0].astype(f32)         # (B, I)  current timestep input
    h = h_scr[...]                   # (B, H)  f32 carry

    # torch.diag(x_t @ W_fx.T) for the square (B == F) case:
    #   left[j] = sum_i x[j, i] * W_fx[j, i]   -> per-row reduce, no matmul.
    # keepdims keeps it sublane-oriented (B,1)==(F,1), so no cross-lane move.
    left_col = jnp.sum(x * wfx_ref[...].astype(f32), axis=1, keepdims=True)

    # right = h_tm1 @ W_fh.T                                        (B, F)
    right = jnp.dot(h.astype(pdt), wfh_t_ref[...], preferred_element_type=f32)

    # (left * right) @ W_hf.T == right @ (left_col * W_hf.T): fold the diag
    # scale into the small (F, H) weight instead of materializing f_t.
    scaled_whf = (left_col * whf_t_ref[...].astype(f32)).astype(pdt)   # (F, H)

    # TODO(synk): the two dots below could be fused into one (B, F+I) @ (F+I, H)
    # MXU op with a per-step stacked weight, but the concat would cost a VMEM
    # copy each step; skipped at these tiny sizes.
    pre = (jnp.dot(right.astype(pdt), scaled_whf, preferred_element_type=f32)
           + jnp.dot(x.astype(pdt), whx_t_ref[...], preferred_element_type=f32))
    h_t = jnp.tanh(pre)              # (B, H) f32 (tanh -> EUP slot)

    # o_t = h_t @ W_oh + b_o   (W_oh deliberately UN-transposed -> needs H == O)
    o_t = jnp.dot(h_t.astype(pdt), woh_ref[...],
                  preferred_element_type=f32) + bo_ref[...]             # (B, O)

    h_scr[...] = h_t
    o_ref[...] = o_t[None, :, :].astype(o_ref.dtype)
    h_ref[...] = h_t[None, :, :].astype(h_ref.dtype)


# ----------------------------------------------------------------------------
# One-time parameter prep (hoisted out of the per-call path): transpose once,
# optionally cast weights to bf16 for the MXU / weight-DMA; bias stays f32.
# ----------------------------------------------------------------------------
def prepare_params(params, weight_dtype=jnp.float32):
    return dict(
        W_fx=params["W_fx"].astype(weight_dtype),              # (F, I)  row-matched for the diag
        W_fh_t=params["W_fh"].T.astype(weight_dtype),          # (H, F)
        W_hf_t=params["W_hf"].T.astype(weight_dtype),          # (F, H)
        W_hx_t=params["W_hx"].T.astype(weight_dtype),          # (I, H)
        W_oh=params["W_oh"].astype(weight_dtype),              # (O, H)  left un-transposed on purpose
        b_o=params["b_o"].reshape(1, -1).astype(jnp.float32),  # (1, O)  elementwise path stays f32
    )


# ----------------------------------------------------------------------------
# Fused sequence runner: one pallas_call for all T timesteps.
# ----------------------------------------------------------------------------
def mult_rnn_sequence(x_seq, h0, prep):
    T, B, I = x_seq.shape
    H = h0.shape[1]
    F = prep["W_fx"].shape[0]
    O = prep["W_oh"].shape[0]
    assert B == F, "torch.diag semantics require batch == factor_size"
    assert H == O, "h_t @ W_oh (un-transposed) requires hidden_size == output_size"

    c2 = lambda t: (0, 0)  # constant block index -> operand DMA'd once, stays resident

    grid_spec = pltpu.PrefetchScalarGridSpec(
        num_scalar_prefetch=0,
        grid=(T,),
        in_specs=[
            pl.BlockSpec((1, B, I), lambda t: (t, 0, 0)),   # x_t streamed (double-buffered) per step
            pl.BlockSpec((B, H), c2),                       # h0 (read only at t == 0)
            pl.BlockSpec((F, I), c2),                       # W_fx
            pl.BlockSpec((H, F), c2),                       # W_fh.T
            pl.BlockSpec((F, H), c2),                       # W_hf.T
            pl.BlockSpec((I, H), c2),                       # W_hx.T
            pl.BlockSpec((O, H), c2),                       # W_oh
            pl.BlockSpec((1, O), c2),                       # b_o
        ],
        out_specs=(
            pl.BlockSpec((1, B, O), lambda t: (t, 0, 0)),   # o_t per step
            pl.BlockSpec((1, B, H), lambda t: (t, 0, 0)),   # h_t per step
        ),
        scratch_shapes=[pltpu.VMEM((B, H), jnp.float32)],   # hidden-state carry across the grid
    )
    # TODO(synk): at production sizes, add a leading batch-tile grid axis marked
    # "parallel" (v7x: 2 TCs) and re-derive weight residency against 64 MiB VMEM;
    # the time axis below must stay "arbitrary" (true recurrence).
    return pl.pallas_call(
        mult_rnn_seq_kernel,
        out_shape=(jax.ShapeDtypeStruct((T, B, O), jnp.float32),
                   jax.ShapeDtypeStruct((T, B, H), jnp.float32)),
        grid_spec=grid_spec,
        compiler_params=pltpu.CompilerParams(dimension_semantics=("arbitrary",)),
    )(x_seq, h0, prep["W_fx"], prep["W_fh_t"], prep["W_hf_t"],
      prep["W_hx_t"], prep["W_oh"], prep["b_o"])


def mult_rnn_forward(x_t, h_tm1, prep):
    """Single-step forward == the PyTorch module's forward (T = 1 of the fused kernel)."""
    o_seq, h_seq = mult_rnn_sequence(x_t[None], h_tm1, prep)
    return o_seq[0], h_seq[0]


# ----------------------------------------------------------------------------
# Pure-JAX references, mirroring the PyTorch forward line by line.
# ----------------------------------------------------------------------------
def mult_rnn_step_ref(x_t, h_tm1, p):
    a = x_t @ p["W_fx"].T
    left = jnp.diagonal(a)                       # torch.diag of a square matrix
    right = h_tm1 @ p["W_fh"].T
    f_t = left[None, :] * right
    h_t = jnp.tanh(f_t @ p["W_hf"].T + x_t @ p["W_hx"].T)
    o_t = h_t @ p["W_oh"] + p["b_o"]
    return o_t, h_t


def mult_rnn_sequence_ref(x_seq, h0, p):
    def step(h, x):
        o, h_new = mult_rnn_step_ref(x, h, p)
        return h_new, (o, h_new)
    _, (o_seq, h_seq) = jax.lax.scan(step, h0, x_seq)
    return o_seq, h_seq


if __name__ == "__main__":
    # Small shapes consistent with the module constraints:
    #   batch == factor_size, hidden_size == output_size.
    input_size, hidden_size, factor_size, output_size = 16, 32, 8, 32
    batch = factor_size
    T = 8

    key = jax.random.PRNGKey(0)
    ks = jax.random.split(key, 8)

    def init(k, shape, fan_in):
        bound = 1.0 / np.sqrt(fan_in)
        return jax.random.uniform(k, shape, jnp.float32, -bound, bound)

    # nn.Linear weights: (out_features, in_features); deterministic init.
    params = {
        "W_fx": init(ks[0], (factor_size, input_size), input_size),    # i2f
        "W_fh": init(ks[1], (factor_size, hidden_size), hidden_size),  # h2f
        "W_hf": init(ks[2], (hidden_size, factor_size), factor_size),  # f2h
        "W_hx": init(ks[3], (hidden_size, input_size), input_size),    # i2h
        "W_oh": init(ks[4], (output_size, hidden_size), hidden_size),  # h2o weight
        "b_o":  init(ks[5], (output_size,), hidden_size),              # h2o bias
    }
    # TODO(synk): `small_weights` / `gain` only affect a (missing) init routine,
    # never the forward pass, so they are intentionally not modeled here.

    x_seq = jax.random.normal(ks[6], (T, batch, input_size), jnp.float32)
    h0 = jax.random.normal(ks[7], (batch, hidden_size), jnp.float32)

    # --- f32 path: strict check ------------------------------------------------
    prep_f32 = prepare_params(params, jnp.float32)

    # single step == the module's forward
    o1, h1 = jax.block_until_ready(mult_rnn_forward(x_seq[0], h0, prep_f32))
    o1_ref, h1_ref = mult_rnn_step_ref(x_seq[0], h0, params)
    np.testing.assert_allclose(np.asarray(o1), np.asarray(o1_ref), rtol=1e-4, atol=1e-4)
    np.testing.assert_allclose(np.asarray(h1), np.asarray(h1_ref), rtol=1e-4, atol=1e-4)

    # full fused T-step recurrence in one pallas_call
    o_seq, h_seq = jax.block_until_ready(mult_rnn_sequence(x_seq, h0, prep_f32))
    o_seq_ref, h_seq_ref = mult_rnn_sequence_ref(x_seq, h0, params)
    np.testing.assert_allclose(np.asarray(o_seq), np.asarray(o_seq_ref), rtol=1e-4, atol=1e-4)
    np.testing.assert_allclose(np.asarray(h_seq), np.asarray(h_seq_ref), rtol=1e-4, atol=1e-4)

    # --- bf16-weight path (MXU native rate, half the weight DMA): loose check ---
    prep_bf16 = prepare_params(params, jnp.bfloat16)
    o_bf, h_bf = jax.block_until_ready(mult_rnn_sequence(x_seq, h0, prep_bf16))
    np.testing.assert_allclose(np.asarray(o_bf), np.asarray(o_seq_ref), rtol=8e-2, atol=8e-2)
    np.testing.assert_allclose(np.asarray(h_bf), np.asarray(h_seq_ref), rtol=8e-2, atol=8e-2)

    print("KERNEL_OK")
</pallas_src>

<mosaic_0001>
module attributes {stable_mosaic.version = 11 : i64} {
  func.func @mult_rnn_seq_kernel(%arg0: i32, %arg1: memref<1x8x16xf32, #tpu.memory_space<vmem>>, %arg2: memref<8x32xf32, #tpu.memory_space<vmem>>, %arg3: memref<8x16xf32, #tpu.memory_space<vmem>>, %arg4: memref<32x8xf32, #tpu.memory_space<vmem>>, %arg5: memref<8x32xf32, #tpu.memory_space<vmem>>, %arg6: memref<16x32xf32, #tpu.memory_space<vmem>>, %arg7: memref<32x32xf32, #tpu.memory_space<vmem>>, %arg8: memref<1x32xf32, #tpu.memory_space<vmem>>, %arg9: memref<1x8x32xf32, #tpu.memory_space<vmem>>, %arg10: memref<1x8x32xf32, #tpu.memory_space<vmem>>, %arg11: memref<8x32xf32, #tpu.memory_space<vmem>>) attributes {dimension_semantics = [#tpu.dimension_semantics<arbitrary>], iteration_bounds = array<i64: 1>, scalar_prefetch = 0 : i64, scratch_operands = 1 : i64, tpu.core_type = #tpu.core_type<tc>, window_params = [{transform_indices = @transform_0, window_bounds = array<i64: 1, 8, 16>}, {pipeline_mode = #tpu.pipeline_mode<synchronous>, transform_indices = @transform_1, window_bounds = array<i64: 8, 32>}, {pipeline_mode = #tpu.pipeline_mode<synchronous>, transform_indices = @transform_2, window_bounds = array<i64: 8, 16>}, {pipeline_mode = #tpu.pipeline_mode<synchronous>, transform_indices = @transform_3, window_bounds = array<i64: 32, 8>}, {pipeline_mode = #tpu.pipeline_mode<synchronous>, transform_indices = @transform_4, window_bounds = array<i64: 8, 32>}, {pipeline_mode = #tpu.pipeline_mode<synchronous>, transform_indices = @transform_5, window_bounds = array<i64: 16, 32>}, {pipeline_mode = #tpu.pipeline_mode<synchronous>, transform_indices = @transform_6, window_bounds = array<i64: 32, 32>}, {pipeline_mode = #tpu.pipeline_mode<synchronous>, transform_indices = @transform_7, window_bounds = array<i64: 1, 32>}, {transform_indices = @transform_8, window_bounds = array<i64: 1, 8, 32>}, {transform_indices = @transform_9, window_bounds = array<i64: 1, 8, 32>}]} {
    %c0_i32 = arith.constant 0 : i32
    %0 = arith.cmpi eq, %arg0, %c0_i32 : i32
    %1 = arith.extui %0 : i1 to i32
    %c0_i32_0 = arith.constant 0 : i32
    %2 = arith.cmpi ne, %1, %c0_i32_0 : i32
    scf.if %2 {
      %c0_29 = arith.constant 0 : index
      %c0_30 = arith.constant 0 : index
      %30 = vector.load %arg2[%c0_29, %c0_30] : memref<8x32xf32, #tpu.memory_space<vmem>>, vector<8x32xf32>
      %c0_31 = arith.constant 0 : index
      %c0_32 = arith.constant 0 : index
      %31 = vector.load %arg11[%c0_31, %c0_32] : memref<8x32xf32, #tpu.memory_space<vmem>>, vector<8x32xf32>
      tpu.vector_store %arg11[%c0_31, %c0_32], %30 {strides = array<i32>} : memref<8x32xf32, #tpu.memory_space<vmem>>, vector<8x32xf32>,
    } else {
    }
    %c0 = arith.constant 0 : index
    %c0_1 = arith.constant 0 : index
    %c0_2 = arith.constant 0 : index
    %3 = vector.load %arg1[%c0, %c0_1, %c0_2] : memref<1x8x16xf32, #tpu.memory_space<vmem>>, vector<1x8x16xf32>
    %4 = vector.shape_cast %3 : vector<1x8x16xf32> to vector<8x16xf32>
    %c0_3 = arith.constant 0 : index
    %c0_4 = arith.constant 0 : index
    %5 = vector.load %arg11[%c0_3, %c0_4] : memref<8x32xf32, #tpu.memory_space<vmem>>, vector<8x32xf32>
    %c0_5 = arith.constant 0 : index
    %c0_6 = arith.constant 0 : index
    %6 = vector.load %arg3[%c0_5, %c0_6] : memref<8x16xf32, #tpu.memory_space<vmem>>, vector<8x16xf32>
    %7 = arith.mulf %4, %6 : vector<8x16xf32>
    %cst = arith.constant dense<0.000000e+00> : vector<8xf32>
    %8 = vector.multi_reduction <add>, %7, %cst [1] : vector<8x16xf32> to vector<8xf32>
    %9 = vector.shape_cast %8 : vector<8xf32> to vector<8x1xf32>
    %c0_7 = arith.constant 0 : index
    %c0_8 = arith.constant 0 : index
    %10 = vector.load %arg4[%c0_7, %c0_8] : memref<32x8xf32, #tpu.memory_space<vmem>>, vector<32x8xf32>
    %cst_9 = arith.constant dense<0.000000e+00> : vector<8x8xf32>
    %11 = tpu.matmul %5, %10, %cst_9 {dimension_numbers = #tpu.dot_dimension_numbers<[1], [0], [0], [1], [0, 0, 1, 1], [], []>, precision = #tpu.contract_precision<fp32>} : vector<8x32xf32>, vector<32x8xf32>, vector<8x8xf32> -> vector<8x8xf32>
    %c0_10 = arith.constant 0 : index
    %c0_11 = arith.constant 0 : index
    %12 = vector.load %arg5[%c0_10, %c0_11] : memref<8x32xf32, #tpu.memory_space<vmem>>, vector<8x32xf32>
    %13 = vector.broadcast %9 : vector<8x1xf32> to vector<8x32xf32>
    %14 = arith.mulf %13, %12 : vector<8x32xf32>
    %cst_12 = arith.constant dense<0.000000e+00> : vector<8x32xf32>
    %15 = tpu.matmul %11, %14, %cst_12 {dimension_numbers = #tpu.dot_dimension_numbers<[1], [0], [0], [1], [0, 0, 1, 1], [], []>, precision = #tpu.contract_precision<fp32>} : vector<8x8xf32>, vector<8x32xf32>, vector<8x32xf32> -> vector<8x32xf32>
    %c0_13 = arith.constant 0 : index
    %c0_14 = arith.constant 0 : index
    %16 = vector.load %arg6[%c0_13, %c0_14] : memref<16x32xf32, #tpu.memory_space<vmem>>, vector<16x32xf32>
    %cst_15 = arith.constant dense<0.000000e+00> : vector<8x32xf32>
    %17 = tpu.matmul %4, %16, %cst_15 {dimension_numbers = #tpu.dot_dimension_numbers<[1], [0], [0], [1], [0, 0, 1, 1], [], []>, precision = #tpu.contract_precision<fp32>} : vector<8x16xf32>, vector<16x32xf32>, vector<8x32xf32> -> vector<8x32xf32>
    %18 = arith.addf %15, %17 : vector<8x32xf32>
    %19 = math.tanh %18 : vector<8x32xf32>
    %c0_16 = arith.constant 0 : index
    %c0_17 = arith.constant 0 : index
    %20 = vector.load %arg7[%c0_16, %c0_17] : memref<32x32xf32, #tpu.memory_space<vmem>>, vector<32x32xf32>
    %cst_18 = arith.constant dense<0.000000e+00> : vector<8x32xf32>
    %21 = tpu.matmul %19, %20, %cst_18 {dimension_numbers = #tpu.dot_dimension_numbers<[1], [0], [0], [1], [0, 0, 1, 1], [], []>, precision = #tpu.contract_precision<fp32>} : vector<8x32xf32>, vector<32x32xf32>, vector<8x32xf32> -> vector<8x32xf32>
    %c0_19 = arith.constant 0 : index
    %c0_20 = arith.constant 0 : index
    %22 = vector.load %arg8[%c0_19, %c0_20] : memref<1x32xf32, #tpu.memory_space<vmem>>, vector<1x32xf32>
    %23 = vector.broadcast %22 : vector<1x32xf32> to vector<8x32xf32>
    %24 = arith.addf %21, %23 : vector<8x32xf32>
    %c0_21 = arith.constant 0 : index
    %c0_22 = arith.constant 0 : index
    %25 = vector.load %arg11[%c0_21, %c0_22] : memref<8x32xf32, #tpu.memory_space<vmem>>, vector<8x32xf32>
    tpu.vector_store %arg11[%c0_21, %c0_22], %19 {strides = array<i32>} : memref<8x32xf32, #tpu.memory_space<vmem>>, vector<8x32xf32>,
    %26 = vector.shape_cast %24 : vector<8x32xf32> to vector<1x8x32xf32>
    %c0_23 = arith.constant 0 : index
    %c0_24 = arith.constant 0 : index
    %c0_25 = arith.constant 0 : index
    %27 = vector.load %arg9[%c0_23, %c0_24, %c0_25] : memref<1x8x32xf32, #tpu.memory_space<vmem>>, vector<1x8x32xf32>
    tpu.vector_store %arg9[%c0_23, %c0_24, %c0_25], %26 {strides = array<i32>} : memref<1x8x32xf32, #tpu.memory_space<vmem>>, vector<1x8x32xf32>,
    %28 = vector.shape_cast %19 : vector<8x32xf32> to vector<1x8x32xf32>
    %c0_26 = arith.constant 0 : index
    %c0_27 = arith.constant 0 : index
    %c0_28 = arith.constant 0 : index
    %29 = vector.load %arg10[%c0_26, %c0_27, %c0_28] : memref<1x8x32xf32, #tpu.memory_space<vmem>>, vector<1x8x32xf32>
    tpu.vector_store %arg10[%c0_26, %c0_27, %c0_28], %28 {strides = array<i32>} : memref<1x8x32xf32, #tpu.memory_space<vmem>>, vector<1x8x32xf32>,
    return
  }
  func.func @transform_0(%arg0: i32) -> (i32, i32, i32) {
    %c0_i32 = arith.constant 0 : i32
    %c0_i32_0 = arith.constant 0 : i32
    %c0_i32_1 = arith.constant 0 : i32
    return %arg0, %c0_i32, %c0_i32_0 : i32, i32, i32
  }
  func.func @transform_1(%arg0: i32) -> (i32, i32) {
    %c0_i32 = arith.constant 0 : i32
    %c0_i32_0 = arith.constant 0 : i32
    %c0_i32_1 = arith.constant 0 : i32
    return %c0_i32, %c0_i32_0 : i32, i32
  }
  func.func @transform_2(%arg0: i32) -> (i32, i32) {
    %c0_i32 = arith.constant 0 : i32
    %c0_i32_0 = arith.constant 0 : i32
    %c0_i32_1 = arith.constant 0 : i32
    return %c0_i32, %c0_i32_0 : i32, i32
  }
  func.func @transform_3(%arg0: i32) -> (i32, i32) {
    %c0_i32 = arith.constant 0 : i32
    %c0_i32_0 = arith.constant 0 : i32
    %c0_i32_1 = arith.constant 0 : i32
    return %c0_i32, %c0_i32_0 : i32, i32
  }
  func.func @transform_4(%arg0: i32) -> (i32, i32) {
    %c0_i32 = arith.constant 0 : i32
    %c0_i32_0 = arith.constant 0 : i32
    %c0_i32_1 = arith.constant 0 : i32
    return %c0_i32, %c0_i32_0 : i32, i32
  }
  func.func @transform_5(%arg0: i32) -> (i32, i32) {
    %c0_i32 = arith.constant 0 : i32
    %c0_i32_0 = arith.constant 0 : i32
    %c0_i32_1 = arith.constant 0 : i32
    return %c0_i32, %c0_i32_0 : i32, i32
  }
  func.func @transform_6(%arg0: i32) -> (i32, i32) {
    %c0_i32 = arith.constant 0 : i32
    %c0_i32_0 = arith.constant 0 : i32
    %c0_i32_1 = arith.constant 0 : i32
    return %c0_i32, %c0_i32_0 : i32, i32
  }
  func.func @transform_7(%arg0: i32) -> (i32, i32) {
    %c0_i32 = arith.constant 0 : i32
    %c0_i32_0 = arith.constant 0 : i32
    %c0_i32_1 = arith.constant 0 : i32
    return %c0_i32, %c0_i32_0 : i32, i32
  }
  func.func @transform_8(%arg0: i32) -> (i32, i32, i32) {
    %c0_i32 = arith.constant 0 : i32
    %c0_i32_0 = arith.constant 0 : i32
    %c0_i32_1 = arith.constant 0 : i32
    return %arg0, %c0_i32, %c0_i32_0 : i32, i32, i32
  }
  func.func @transform_9(%arg0: i32) -> (i32, i32, i32) {
    %c0_i32 = arith.constant 0 : i32
    %c0_i32_0 = arith.constant 0 : i32
    %c0_i32_1 = arith.constant 0 : i32
    return %arg0, %c0_i32, %c0_i32_0 : i32, i32, i32
  }
}

</mosaic_0001>

<bundles_post_ra>
// kernel: tpu_custom_call.1
= control target key start
LH: loop header
LB: loop body
LE: loop exit
PB: predicated region body
PF: predicated region fallthrough
CT: control target
= control target key end

     0   :  { %15 = vsyncpa [#allocation4], 0  ;;  %s1128_s0 = inlined_call_operand.vmem [shape: f32[1,8,16], index: 0, kind: input, shape index: {}]   ;;  %s1129_s1 = inlined_call_operand.hbm [shape: f32[8,32], index: 1, kind: input, shape index: {}]   ;;  %s1130_s2 = inlined_call_operand.hbm [shape: f32[8,16], index: 2, kind: input, shape index: {}]   ;;  %s1131_s3 = inlined_call_operand.vmem [shape: f32[32,8], index: 3, kind: input, shape index: {}]   ;;  %s1132_s4 = inlined_call_operand.hbm [shape: f32[8,32], index: 4, kind: input, shape index: {}]   ;;  %s1133_s5 = inlined_call_operand.hbm [shape: f32[16,32], index: 5, kind: input, shape index: {}]   ;;  %s1134_s6 = inlined_call_operand.vmem [shape: f32[32,32], index: 6, kind: input, shape index: {}]   ;;  %s1135_s7 = inlined_call_operand.vmem [shape: f32[1,32], index: 7, kind: input, shape index: {}]   ;;  %s1136_s8 = inlined_call_operand.hbm [shape: f32[1,8,32], index: 8, kind: output, shape index: {0}]   ;;  %s1137_s9 = inlined_call_operand.hbm [shape: f32[1,8,32], index: 9, kind: output, shape index: {1}]  }
   0x1   :  { %16 = vsyncpa [#allocation7], 0 }
   0x2   :  { %17 = vsyncpa [#allocation10], 0 }
   0x3   :  { %18 = vsyncpa [#allocation5], 0  ;;  %s38_s11 = sshll.u32 %s1130_s2, 4  ;;  %s39_s11 = int_to_ptr.hbm [resolvable:$true] %s38_s11 }
   0x4   :  { %19 = vsyncpa [#allocation13], 0  ;;  %s1014_s12 = smov [#allocation6]   ;;  %s27_s16 = sshll.u32 %s1129_s1, 4  ;;  %s28_s16 = int_to_ptr.hbm [resolvable:$true] %s27_s16 }
   0x5   :  { %s40_s13 = sshll.u32 %s1014_s12, 4  ;;  %s1015_s17 = smov [#allocation3]   ;;  %s41_s13 = int_to_ptr.vmem [resolvable:$true] %s40_s13 }
   0x6   :  { %43 = dma.hbm_to_vmem [thread:$0]  %s39_s11, 128, %s41_s13, [#allocation7]  }
   0x7   :  { %s29_s18 = sshll.u32 %s1015_s17, 4  ;;  %s51_s21 = sshll.u32 %s1132_s4, 4  ;;  %s30_s18 = int_to_ptr.vmem [resolvable:$true] %s29_s18  ;;  %s52_s21 = int_to_ptr.hbm [resolvable:$true] %s51_s21 }
   0x8   :  { %32 = dma.hbm_to_vmem [thread:$0]  %s28_s16, 128, %s30_s18, [#allocation4]  }
   0x9   :  { %s61_s23 = sshll.u32 %s1133_s5, 4  ;;  %s1016_s24 = smov [#allocation8]   ;;  %s62_s23 = int_to_ptr.hbm [resolvable:$true] %s61_s23 }
   0xa   :  { %s53_s25 = sshll.u32 %s1016_s24, 4  ;;  %s1017_s1 = smov [#allocation9]   ;;  %s54_s25 = int_to_ptr.vmem [resolvable:$true] %s53_s25 }
   0xb   :  { %56 = dma.hbm_to_vmem [thread:$0]  %s52_s21, 128, %s54_s25, [#allocation7]  }
   0xc   :  { %s63_s26 = sshll.u32 %s1017_s1, 4  ;;  %s1018_s27 = smov 128   ;;  %s64_s26 = int_to_ptr.vmem [resolvable:$true] %s63_s26 }
   0xd   :  { %s1019_s28 = smov 8  }
   0xe   :  { %69 = dma.hbm_to_vmem [thread:$0]  %s62_s23, 256, %s64_s26, [#allocation10], %s1018_s27, %s1018_s27, %s1019_s28  }
   0xf   :  { %1004 = dma.done.wait [#allocation4], 128  }
  0x10   :  { %1005 = vsyncadd [#allocation4], 4294967168 }
  0x11   :  { %1006 = dma.done.wait [#allocation7], 256  }
  0x12   :  { %1007 = vsyncadd [#allocation7], 4294967040 }
  0x13   :  { %1008 = dma.done.wait [#allocation10], 256  }
  0x14   :  { %1009 = vsyncadd [#allocation10], 4294967040  ;;  %vm95_vm0 = vcmask 261120   ;;  %v108_v0 = vld [vmem:[%s1131_s3 + $0x18] sm:$0xff]  ;;  %v107_v1 = vld [vmem:[%s1131_s3 + $0x10] sm:$0xff]  ;;  %vm101_vm1 = vcmask 130048  }
  0x15   :  { %v106_v2 = vld [vmem:[%s1131_s3 + $0x8] sm:$0xff]  ;;  %v125_v3 = vand.u32 4294901760, %v108_v0  ;;  %v127_v4 = vand.u32 4294901760, %v107_v1  ;;  %v105_v6 = vld [vmem:[%s1131_s3] sm:$0xff]  ;;  %v99_v10 = vld [vmem:[#allocation6] sm:$0xff]  ;;  %vm464_vm2 = vcmask 64512  }
  0x16   :  { %v129_v5 = vand.u32 4294901760, %v106_v2  ;;  %v94_v7 = vld [vmem:[#allocation3] sm:$0xff]  ;;  %v97_v8 = vld [vmem:[%s1128_s0] sm:$0xff]  ;;  %v131_v9 = vand.u32 4294901760, %v105_v6  ;;  %v298_v54 = vld [vmem:[#allocation8] sm:$0xff]  ;;  %s832_s24 = sshll.u32 %s1137_s9, 4  ;;  %s833_s24 = int_to_ptr.hbm [resolvable:$true] %s832_s24 }
  0x17   :  { %96 = vst.msk [vmem:[#allocation2] sm:$0xff] %vm95_vm0, %v94_v7  ;;  %v303_v11 = vsel %vm101_vm1, %v97_v8, 0  ;;  %v155_v12 = vsub.f32 %v108_v0, %v125_v3  ;;  %v161_v13 = vsub.f32 %v107_v1, %v127_v4  ;;  %226 = vmatpush.msra.mxu3 %v125_v3  ;;  %126 = vmatpush.msra.mxu0 %v125_v3  ;;  %v301_v37 = vld [vmem:[#allocation9 + $0x8] sm:$0xff]  ;;  %v300_v41 = vld [vmem:[#allocation9] sm:$0xff]  ;;  %s1021_s26 = smov [#allocation11]   ;;  %s821_s4 = sshll.u32 %s1136_s8, 4  ;;  %s822_s4 = int_to_ptr.hbm [resolvable:$true] %s821_s4 }
  0x18   :  { %v167_v14 = vsub.f32 %v106_v2, %v129_v5  ;;  %v173_v15 = vsub.f32 %v105_v6, %v131_v9  ;;  %v100_v16 = vmul.f32 %v99_v10, %v97_v8  ;;  %v319_v38 = vand.u32 4294901760, %v301_v37  ;;  %s819_s27 = sshll.u32 %s1021_s26, 4  ;;  %s820_s27 = int_to_ptr.vmem [resolvable:$true] %s819_s27 }
  0x19   :  { %197 = vmatpush.msra.mxu2 %v155_v12  ;;  %v156_v17 = vand.u32 4294901760, %v155_v12  ;;  %228 = vmatpush.msra.mxu3 %v127_v4  ;;  %v162_v18 = vand.u32 4294901760, %v161_v13  ;;  %v323_v39 = vand.u32 4294901760, %v303_v11  ;;  %v321_v43 = vand.u32 4294901760, %v300_v41 }
  0x1a   :  { %v168_v19 = vand.u32 4294901760, %v167_v14  ;;  %128 = vmatpush.msra.mxu0 %v127_v4  ;;  %v174_v20 = vand.u32 4294901760, %v173_v15  ;;  %v102_v21 = vsel %vm101_vm1, %v100_v16, 0.0  ;;  %v347_v42 = vsub.f32 %v301_v37, %v319_v38 }
  0x1b   :  { %200 = vmatpush.msra.mxu2 %v161_v13  ;;  %v157_v22 = vsub.f32 %v155_v12, %v156_v17  ;;  %v163_v23 = vsub.f32 %v161_v13, %v162_v18  ;;  %230 = vmatpush.msra.mxu3 %v129_v5  ;;  %v324_v40 = vsub.f32 %v303_v11, %v323_v39 }
  0x1c   :  { %v169_v24 = vsub.f32 %v167_v14, %v168_v19  ;;  %130 = vmatpush.msra.mxu0 %v129_v5  ;;  %103 = vadd.xlane.f32.xlu0 %v102_v21  ;;  %v175_v28 = vsub.f32 %v173_v15, %v174_v20  ;;  %v348_v44 = vand.u32 4294901760, %v347_v42  ;;  %v353_v45 = vsub.f32 %v300_v41, %v321_v43 }
  0x1d   :  { %v158_v25 = vand.u32 4294901760, %v157_v22  ;;  %203 = vmatpush.msra.mxu2 %v167_v14  ;;  %v164_v26 = vand.u32 4294901760, %v163_v23  ;;  %232 = vmatpush.msra.mxu3 %v131_v9  ;;  %v325_v46 = vand.u32 4294901760, %v324_v40 }
  0x1e   :  { %v98_v27 = vld [vmem:[#allocation2] sm:$0xff]  ;;  %132 = vmatpush.msra.mxu0 %v131_v9  ;;  %v170_v31 = vand.u32 4294901760, %v169_v24  ;;  %v176_v33 = vand.u32 4294901760, %v175_v28  ;;  %v349_v47 = vsub.f32 %v347_v42, %v348_v44  ;;  %v354_v48 = vand.u32 4294901760, %v353_v45 }
  0x1f   :  { %v111_v29 = vsel %vm95_vm0, %v98_v27, 0  ;;  %159 = vmatpush.msra.mxu1 %v158_v25  ;;  %206 = vmatpush.msra.mxu2 %v173_v15  ;;  %v326_v49 = vsub.f32 %v324_v40, %v325_v46  ;;  %v618_v15 = vld [vmem:[%s1134_s6 + $0x18] sm:$0xff]  ;;  %v615_v24 = vld [vmem:[%s1134_s6] sm:$0xff] }
  0x20   :  { %v133_v30 = vand.u32 4294901760, %v111_v29  ;;  %255 = vmatpush.msrb.mxu0 %v156_v17  ;;  %v350_v50 = vand.u32 4294901760, %v349_v47  ;;  %v355_v51 = vsub.f32 %v353_v45, %v354_v48  ;;  %v638_v16 = vand.u32 4294901760, %v618_v15  ;;  %v617_v17 = vld [vmem:[%s1134_s6 + $0x10] sm:$0xff] }
  0x21   :  { %165 = vmatpush.msra.mxu1 %v164_v26  ;;  %320 = vmatpush.msrb.mxu2 %v319_v38  ;;  %v327_v52 = vand.u32 4294901760, %v326_v49 }
  0x22   :  { %v134_v32 = vsub.f32 %v111_v29, %v133_v30  ;;  %259 = vmatpush.msrb.mxu0 %v162_v18  ;;  %351 = vmatpush.msrb.mxu3 %v350_v50  ;;  %v356_v53 = vand.u32 4294901760, %v355_v51  ;;  %v668_v18 = vsub.f32 %v618_v15, %v638_v16 }
  0x23   :  { %171 = vmatpush.msra.mxu1 %v170_v31  ;;  %322 = vmatpush.msrb.mxu2 %v321_v43 }
  0x24   :  { %209 = vmatmul.f32.vlgmr.msra.gmra.mxu2 %v134_v32  ;;  %v135_v34 = vand.u32 4294901760, %v134_v32  ;;  %263 = vmatpush.msrb.mxu0 %v168_v19  ;;  %v640_v19 = vand.u32 4294901760, %v617_v17  ;;  %v669_v21 = vand.u32 4294901760, %v668_v18 }
  0x25   :  { %177 = vmatpush.msra.mxu1 %v176_v33  ;;  %431 = vmatpush.msra.mxu2 %v348_v44 }
  0x26   :  { %236 = vmatmul.f32.vlgmr.msra.gmra.mxu3 %v135_v34  ;;  %v136_v35 = vsub.f32 %v134_v32, %v135_v34  ;;  %179 = vmatmul.f32.vlgmr.msra.gmra.mxu1 %v133_v30  ;;  %v674_v22 = vsub.f32 %v617_v17, %v640_v19  ;;  %v670_v27 = vsub.f32 %v668_v18, %v669_v21 }
  0x27   :  { %267 = vmatpush.msrb.mxu0 %v174_v20  ;;  %286 = vmatpush.msrb.mxu1 %v125_v3  ;;  %v616_v20 = vld [vmem:[%s1134_s6 + $0x8] sm:$0xff]  ;;  %s1020_s6 = smov [#allocation12]  }
  0x28   :  { %v137_v36 = vand.u32 4294901760, %v136_v35  ;;  %435 = vmatpush.msra.mxu2 %v354_v48  ;;  %357 = vmatpush.msrb.mxu3 %v356_v53  ;;  %v642_v23 = vand.u32 4294901760, %v616_v20  ;;  %v675_v28 = vand.u32 4294901760, %v674_v22  ;;  %v671_v32 = vand.u32 4294901760, %v670_v27  ;;  %s830_s2 = sshll.u32 %s1020_s6, 4  ;;  %s831_s2 = int_to_ptr.vmem [resolvable:$true] %s830_s2 }
  0x29   :  { %288 = vmatpush.msrb.mxu1 %v127_v4 }
  0x2a   :  { %138 = vmatmul.f32.vlgmr.msra.gmra.mxu0 %v137_v36  ;;  %456 = vmatpush.msra.mxu3 %v319_v38  ;;  %v680_v29 = vsub.f32 %v616_v20, %v642_v23  ;;  %v676_v33 = vsub.f32 %v674_v22, %v675_v28 }
  0x2b   :  { %290 = vmatpush.msrb.mxu1 %v129_v5  ;;  %379 = vmatpush.msra.mxu0 %v347_v42 }
  0x2c   :  { %328 = vmatmul.f32.vlgmr.msrb.gmra.mxu2 %v327_v52  ;;  %458 = vmatpush.msra.mxu3 %v321_v43  ;;  %v681_v34 = vand.u32 4294901760, %v680_v29  ;;  %v677_v37 = vand.u32 4294901760, %v676_v33 }
  0x2d   :  { %292 = vmatpush.msrb.mxu1 %v131_v9  ;;  %382 = vmatpush.msra.mxu0 %v353_v45 }
  0x2e   :  { %294 = vmatmul.f32.vlgmr.msrb.gmra.mxu1 %v133_v30  ;;  %359 = vmatmul.f32.vlgmr.msrb.gmra.mxu3 %v323_v39 }
  0x2f   :  { %404 = vmatpush.msra.mxu1 %v319_v38  ;;  %v682_v38 = vsub.f32 %v680_v29, %v681_v34 }
  0x31   :  { %406 = vmatpush.msra.mxu1 %v321_v43  ;;  %v683_v41 = vand.u32 4294901760, %v682_v38 }
  0x32   :  { %269 = vmatmul.f32.vlgmr.msrb.gmra.mxu0 %v133_v30  ;;  %v644_v30 = vand.u32 4294901760, %v615_v24 }
  0x34   :  { %437 = vmatmul.f32.vlgmr.msra.gmra.mxu2 %v323_v39  ;;  %v686_v35 = vsub.f32 %v615_v24, %v644_v30 }
  0x36   :  { %410 = vmatmul.f32.vlgmr.msra.gmra.mxu1 %v325_v46  ;;  %460 = vmatmul.f32.vlgmr.msra.gmra.mxu3 %v323_v39  ;;  %v687_v39 = vand.u32 4294901760, %v686_v35 }
  0x38   :  { %v688_v42 = vsub.f32 %v686_v35, %v687_v39 }
  0x3a   :  { %385 = vmatmul.f32.vlgmr.msra.gmra.mxu0 %v324_v40  ;;  %v689_v43 = vand.u32 4294901760, %v688_v42 }
  0x8f   :  { %v104_v55 = vpop.xlane.xlu0 %103 }
  0x90   :  { %v299_v56 = vmul.f32 %v298_v54, %v104_v55 }
  0x92   :  { %v483_v57 = vand.u32 4294901760, %v299_v56 }
  0x94   :  { %v510_v58 = vsub.f32 %v299_v56, %v483_v57  ;;  %484 = vmatpush.msrb.mxu0 %v483_v57  ;;  %560 = vmatpush.msrb.mxu3 %v483_v57 }
  0x96   :  { %v511_v59 = vand.u32 4294901760, %v510_v58  ;;  %537 = vmatpush.msrb.mxu2 %v510_v58  ;;  %672 = vmatpush.msra.mxu3 %v671_v32 }
  0x98   :  { %v512_v60 = vsub.f32 %v510_v58, %v511_v59  ;;  %586 = vmatpush.msra.mxu0 %v511_v59  ;;  %639 = vmatpush.msra.mxu2 %v638_v16 }
  0x99   :  { %678 = vmatpush.msra.mxu3 %v677_v37 }
  0x9a   :  { %v513_v61 = vand.u32 4294901760, %v512_v60  ;;  %641 = vmatpush.msra.mxu2 %v640_v19 }
  0x9b   :  { %684 = vmatpush.msra.mxu3 %v683_v41 }
  0x9c   :  { %514 = vmatpush.msrb.mxu1 %v513_v61  ;;  %643 = vmatpush.msra.mxu2 %v642_v23 }
  0x9d   :  { %690 = vmatpush.msra.mxu3 %v689_v43 }
  0x9e   :  { %608 = vmatpush.msra.mxu1 %v483_v57  ;;  %645 = vmatpush.msra.mxu2 %v644_v30 }
  0xa3   :  { %v180_v62 = vpop.f32.mrf.mxu1 }
  0xa7   :  { %v139_v63 = vpop.f32.mrf.mxu0  ;;  %v210_v0 = vpop.f32.mrf.mxu2 }
  0xa8   :  { %v181_v1 = vadd.f32 %v180_v62, %v139_v63 }
  0xa9   :  { %v237_v3 = vpop.f32.mrf.mxu3 }
  0xaa   :  { %v211_v2 = vadd.f32 %v210_v0, %v181_v1 }
  0xab   :  { %v295_v6 = vpop.f32.mrf.mxu1 }
  0xac   :  { %v238_v4 = vadd.f32 %v237_v3, %v211_v2 }
  0xaf   :  { %v270_v5 = vpop.f32.mrf.mxu0  ;;  %v329_v25 = vpop.f32.mrf.mxu2 }
  0xb0   :  { %v271_v7 = vadd.f32 %v270_v5, %v238_v4  ;;  %v857_v5 = vld [vmem:[%s1135_s7] ss:$0 sm:$0xff] }
  0xb1   :  { %v360_v26 = vpop.f32.mrf.mxu3 }
  0xb2   :  { %v296_v8 = vadd.f32 %v295_v6, %v271_v7  ;;  %v361_v31 = vadd.f32 %v360_v26, %v329_v25 }
  0xb3   :  { %v411_v44 = vpop.f32.mrf.mxu1 }
  0xb4   :  { %v466_v9 = vsel %vm464_vm2, %v296_v8, 0 }
  0xb5   :  { %v485_v10 = vand.u32 4294901760, %v466_v9 }
  0xb7   :  { %v486_v11 = vsub.f32 %v466_v9, %v485_v10  ;;  %516 = vmatmul.f32.vlgmr.msrb.gmra.mxu1 %v485_v10  ;;  %v386_v36 = vpop.f32.mrf.mxu0  ;;  %v438_v46 = vpop.f32.mrf.mxu2 }
  0xb8   :  { %739 = vmatpush.msrb.mxu1 %v638_v16  ;;  %v387_v40 = vadd.f32 %v386_v36, %v361_v31 }
  0xb9   :  { %540 = vmatmul.f32.vlgmr.msrb.gmra.mxu2 %v486_v11  ;;  %v487_v12 = vand.u32 4294901760, %v486_v11  ;;  %v461_v48 = vpop.f32.mrf.mxu3 }
  0xba   :  { %741 = vmatpush.msrb.mxu1 %v640_v19  ;;  %768 = vmatpush.msrb.mxu2 %v669_v21  ;;  %v412_v45 = vadd.f32 %v411_v44, %v387_v40 }
  0xbb   :  { %564 = vmatmul.f32.vlgmr.msrb.gmra.mxu3 %v487_v12  ;;  %v488_v13 = vsub.f32 %v486_v11, %v487_v12 }
  0xbc   :  { %743 = vmatpush.msrb.mxu1 %v642_v23  ;;  %772 = vmatpush.msrb.mxu2 %v675_v28  ;;  %v439_v47 = vadd.f32 %v438_v46, %v412_v45 }
  0xbd   :  { %v489_v14 = vand.u32 4294901760, %v488_v13  ;;  %799 = vmatpush.msrb.mxu3 %v638_v16 }
  0xbe   :  { %745 = vmatpush.msrb.mxu1 %v644_v30  ;;  %776 = vmatpush.msrb.mxu2 %v681_v34  ;;  %v462_v49 = vadd.f32 %v461_v48, %v439_v47 }
  0xbf   :  { %490 = vmatmul.f32.vlgmr.msrb.gmra.mxu0 %v489_v14  ;;  %610 = vmatmul.f32.vlgmr.msra.gmra.mxu1 %v485_v10 }
  0xc0   :  { %710 = vmatpush.msrb.mxu0 %v668_v18  ;;  %780 = vmatpush.msrb.mxu2 %v687_v39 }
  0xc1   :  { %801 = vmatpush.msrb.mxu3 %v640_v19 }
  0xc2   :  { %713 = vmatpush.msrb.mxu0 %v674_v22 }
  0xc3   :  { %803 = vmatpush.msrb.mxu3 %v642_v23 }
  0xc4   :  { %716 = vmatpush.msrb.mxu0 %v680_v29 }
  0xc5   :  { %805 = vmatpush.msrb.mxu3 %v644_v30 }
  0xc6   :  { %719 = vmatpush.msrb.mxu0 %v686_v35 }
  0xc7   :  { %588 = vmatmul.f32.vlgmr.msra.gmra.mxu0 %v485_v10 }
 0x134   :  { %v517_v50 = vpop.f32.mrf.mxu1 }
 0x13c   :  { %v491_v51 = vpop.f32.mrf.mxu0  ;;  %v541_v54 = vpop.f32.mrf.mxu2 }
 0x13d   :  { %v492_v52 = vadd.f32 %v491_v51, %v462_v49  ;;  %v611_v60 = vpop.f32.mrf.mxu1 }
 0x13e   :  { %v565_v56 = vpop.f32.mrf.mxu3 }
 0x13f   :  { %v518_v53 = vadd.f32 %v517_v50, %v492_v52 }
 0x141   :  { %v542_v55 = vadd.f32 %v541_v54, %v518_v53 }
 0x143   :  { %v566_v57 = vadd.f32 %v565_v56, %v542_v55 }
 0x144   :  { %v589_v58 = vpop.f32.mrf.mxu0 }
 0x145   :  { %v590_v59 = vadd.f32 %v589_v58, %v566_v57 }
 0x147   :  { %v612_v61 = vadd.f32 %v611_v60, %v590_v59 }
 0x149   :  { %858 = vtanh.f32 %v612_v61 }
 0x14f   :  { %v859_v62 = vpop.eup %858 }
 0x150   :  { %811 = vst.msk [vmem:[#allocation2] sm:$0xff] %vm95_vm0, %v859_v62  ;;  %v624_v63 = vsel %vm95_vm0, %v859_v62, 0 }
 0x151   :  { %813 = vst.msk [vmem:[#allocation12] sm:$0xff] %vm95_vm0, %v859_v62  ;;  %v646_v0 = vand.u32 4294901760, %v624_v63 }
 0x152   :  { %835 = dma.vmem_to_hbm [thread:$0]  %s831_s2, 128, %s833_s24, [#allocation13]  }
 0x153   :  { %692 = vmatmul.f32.vlgmr.msra.gmra.mxu3 %v646_v0  ;;  %v647_v1 = vsub.f32 %v624_v63, %v646_v0 }
 0x155   :  { %722 = vmatmul.f32.vlgmr.msrb.gmra.mxu0 %v647_v1  ;;  %v648_v2 = vand.u32 4294901760, %v647_v1 }
 0x157   :  { %749 = vmatmul.f32.vlgmr.msrb.gmra.mxu1 %v648_v2  ;;  %v649_v3 = vsub.f32 %v647_v1, %v648_v2 }
 0x159   :  { %v650_v4 = vand.u32 4294901760, %v649_v3 }
 0x15b   :  { %651 = vmatmul.f32.vlgmr.msra.gmra.mxu2 %v650_v4  ;;  %807 = vmatmul.f32.vlgmr.msrb.gmra.mxu3 %v646_v0 }
 0x163   :  { %782 = vmatmul.f32.vlgmr.msrb.gmra.mxu2 %v646_v0 }
 0x1d2   :  { %v723_v10 = vpop.f32.mrf.mxu0 }
 0x1d4   :  { %v750_v12 = vpop.f32.mrf.mxu1 }
 0x1d6   :  { %v693_v6 = vpop.f32.mrf.mxu3 }
 0x1de   :  { %v652_v7 = vpop.f32.mrf.mxu2  ;;  %v808_v16 = vpop.f32.mrf.mxu3 }
 0x1df   :  { %v653_v8 = vadd.f32 %v857_v5, %v652_v7 }
 0x1e1   :  { %v694_v9 = vadd.f32 %v693_v6, %v653_v8 }
 0x1e3   :  { %v724_v11 = vadd.f32 %v723_v10, %v694_v9 }
 0x1e5   :  { %v751_v13 = vadd.f32 %v750_v12, %v724_v11 }
 0x1e6   :  { %v783_v14 = vpop.f32.mrf.mxu2 }
 0x1e7   :  { %v784_v15 = vadd.f32 %v783_v14, %v751_v13 }
 0x1e9   :  { %v809_v17 = vadd.f32 %v808_v16, %v784_v15 }
 0x1eb   :  { %812 = vst.msk [vmem:[#allocation11] sm:$0xff] %vm95_vm0, %v809_v17 }
 0x1ec   :  { %824 = dma.vmem_to_hbm [thread:$0]  %s820_s27, 128, %s822_s4, [#allocation5]  }
 0x1ed   :  { %1010 = dma.done.wait [#allocation5], 128  }
 0x1ee   :  { %1011 = vsyncadd [#allocation5], 4294967168 }
 0x1ef   :  { %1012 = dma.done.wait [#allocation13], 128  }
 0x1f0   :  { %1013 = vsyncadd [#allocation13], 4294967168 }
 0x1f1   :  { %844 = vsyncpa [#allocation4], 1 }
 0x1f2   :  { %845 = vsyncpa [#allocation7], 1 }
 0x1f3   :  { %846 = vsyncpa [#allocation10], 1 }
 0x1f4   :  { %847 = vsyncpa [#allocation5], 1 }
 0x1f5   :  { %848 = vsyncpa [#allocation13], 1 }

</bundles_post_ra>
